<compile_context>
chip_gen: v6e
topology: v6e:2x2x1
jax: 0.10.0
libtpu: 0.0.40
codegen_flags: <defaults>
</compile_context>

<pallas_src>
import functools

import numpy as np
import jax
import jax.numpy as jnp
from jax.experimental import pallas as pl
from jax.experimental.pallas import tpu as pltpu

_LANES = 128


def _round_up(x, m):
    return ((x + m - 1) // m) * m


def _cdiv(a, b):
    return (a + b - 1) // b


def _block_diag(w, p):
    """Replicate a (din, dout) weight p times along the diagonal -> (p*din, p*dout)."""
    din, dout = w.shape
    eye = jnp.eye(p, dtype=w.dtype)
    return (eye[:, None, :, None] * w[None, :, None, :]).reshape(p * din, p * dout)


def _mlp_kernel(kp_ref, act_ref, w1k_ref, w1a_ref, b1_ref,
                w2_ref, b2_ref, w3_ref, b3_ref, o_ref, *,
                compute_dtype, epilogue_dtype, n_groups):
    """Packed 3-layer MLP + residual on one (TM, P*2K) super-row tile.

    relu(relu([kp|act] @ W1 + b1) @ W2 + b2) @ W3 + b3 + kp with P-fold
    block-diagonal weights.  Layers 2+3 are decomposed into static 128-lane
    groups so the W2 replication is only g = 128//H copies wide.
    """
    f32 = jnp.float32
    kp = kp_ref[...]                                    # (TM, P*Dk) f32, residual base

    # ---- layer 1: h1 = relu([kp | act] @ W1 + b1), W1 split & P-fold block-diag
    h1 = jnp.dot(kp.astype(compute_dtype), w1k_ref[...],
                 preferred_element_type=f32)
    h1 = h1 + jnp.dot(act_ref[...], w1a_ref[...], preferred_element_type=f32)
    b1 = b1_ref[...].astype(epilogue_dtype)
    h1 = jnp.maximum(h1.astype(epilogue_dtype) + b1, 0).astype(compute_dtype)

    # ---- layers 2 + 3, one static 128-lane group at a time.
    # Group j covers weight copies [j*g, (j+1)*g); w2_ref is the small (128,128)
    # g-copy block-diag, w3_ref rows [128j, 128(j+1)) are the matching slice of
    # the full P-copy W3 block-diag.  All slices sit on (8,128) tile boundaries.
    w2s = w2_ref[...]
    b2 = b2_ref[...].astype(epilogue_dtype)
    acc = None
    for j in range(n_groups):
        lo = j * _LANES
        h1_j = h1[:, lo:lo + _LANES]
        h2_j = jnp.dot(h1_j, w2s, preferred_element_type=f32)
        h2_j = jnp.maximum(h2_j.astype(epilogue_dtype) + b2, 0).astype(compute_dtype)
        part = jnp.dot(h2_j, w3_ref[lo:lo + _LANES, :], preferred_element_type=f32)
        acc = part if acc is None else acc + part

    # Residual + final bias in f32: k_{t+1} = k_t + del_k_t.
    o_ref[...] = acc + b3_ref[...] + kp


def pack_params(params, *, compute_dtype=jnp.bfloat16):
    """One-time packing of nn.Linear params into block-diagonal MXU-ready form."""
    w1 = jnp.asarray(params["w1"])
    w2 = jnp.asarray(params["w2"])
    w3 = jnp.asarray(params["w3"])
    H = w1.shape[1]
    Dk = w3.shape[1]               # 2 * num_keypoints
    A = w1.shape[0] - Dk           # action_dim

    assert _LANES % Dk == 0, f"need 128 % (2*num_keypoints) == 0, got 2K={Dk}"
    assert _LANES % H == 0, f"need 128 % hidden == 0, got H={H}"
    P = _LANES // Dk               # super-row packing factor
    g = _LANES // H                # W2 copies per 128-lane group
    assert (P * H) % _LANES == 0, f"need (P*H) % 128 == 0, got P*H={P * H}"
    n_groups = (P * H) // _LANES

    cd = compute_dtype
    f32 = jnp.float32
    packed = {
        "w1k": _block_diag(w1[:Dk].astype(cd), P),      # (P*Dk, P*H)
        "w1a": _block_diag(w1[Dk:].astype(cd), P),      # (P*A,  P*H)
        "w2": _block_diag(w2.astype(cd), g),            # (128, 128)  small!
        "w3": _block_diag(w3.astype(cd), P),            # (P*H,  P*Dk)
        "b1": jnp.tile(jnp.asarray(params["b1"]).astype(f32), P).reshape(1, P * H),
        "b2": jnp.tile(jnp.asarray(params["b2"]).astype(f32), g).reshape(1, g * H),
        "b3": jnp.tile(jnp.asarray(params["b3"]).astype(f32), P).reshape(1, P * Dk),
    }
    meta = dict(P=P, Dk=Dk, A=A, H=H, n_groups=n_groups, compute_dtype=cd)
    return packed, meta


def _auto_epilogue_dtype(compute_dtype):
    """bf16 bias/ReLU epilogues only on chips with a bf16 VPU (v6e / v7x)."""
    if np.dtype(compute_dtype) != np.dtype(jnp.bfloat16):
        return jnp.float32
    try:
        kind = jax.devices()[0].device_kind.lower()
    except Exception:
        return jnp.float32
    if ("v6" in kind) or ("v7" in kind) or ("7x" in kind):
        return jnp.bfloat16
    return jnp.float32             # v5e/older: no bf16 VPU datapath


def keyp_predictor_forward(keyp_seq, action_seq, packed, meta, *,
                           block_rows=1024, epilogue_dtype=None):
    """Pallas implementation of KeypPredictor.forward.

    keyp_seq:   (B, T, K, 2) float32
    action_seq: (B, T, A)    float32
    returns:    (B, T-1, K, 2) float32
    """
    B, T, K, two = keyp_seq.shape
    assert two == 2
    P, Dk, A = meta["P"], meta["Dk"], meta["A"]
    assert Dk == 2 * K and action_seq.shape[-1] == A
    compute_dtype = meta["compute_dtype"]
    if epilogue_dtype is None:
        epilogue_dtype = _auto_epilogue_dtype(compute_dtype)

    N = B * (T - 1)
    # Glue: gather timesteps 0..T-2 and flatten keypoints (no concat needed).
    keyp_rows = keyp_seq[:, :T - 1].reshape(N, Dk).astype(jnp.float32)
    act_rows = action_seq[:, :T - 1].reshape(N, A).astype(compute_dtype)  # bf16 stream

    # Pack P rows per 128-lane super-row; pad only to a multiple of 8 super-rows.
    n_sup = _cdiv(N, P)
    n_sup_pad = _round_up(n_sup, 8)
    N_pad = n_sup_pad * P
    if N_pad != N:
        keyp_rows = jnp.pad(keyp_rows, ((0, N_pad - N), (0, 0)))
        act_rows = jnp.pad(act_rows, ((0, N_pad - N), (0, 0)))
    kp_packed = keyp_rows.reshape(n_sup_pad, P * Dk)      # row-major: free reshape
    act_packed = act_rows.reshape(n_sup_pad, P * A)

    # Tile: >=2 grid steps when there is enough work (v7x 2 TCs), capped by
    # block_rows; last block may be ragged (Pallas masks OOB writes).
    tm = max(8, min(block_rows, _round_up(_cdiv(n_sup_pad, 2), 8)))
    grid = (pl.cdiv(n_sup_pad, tm),)

    def row_spec(width):
        return pl.BlockSpec((tm, width), lambda i: (i, 0))

    def const_spec(shape):                    # VMEM-resident across grid steps
        return pl.BlockSpec(shape, lambda i: (0,) * len(shape))

    kernel = functools.partial(
        _mlp_kernel, compute_dtype=compute_dtype,
        epilogue_dtype=epilogue_dtype, n_groups=meta["n_groups"])

    out_packed = pl.pallas_call(
        kernel,
        out_shape=jax.ShapeDtypeStruct((n_sup_pad, P * Dk), jnp.float32),
        grid=grid,
        in_specs=[
            row_spec(P * Dk),                      # packed keypoints (+ residual)
            row_spec(P * A),                       # packed actions (bf16)
            const_spec(packed["w1k"].shape),       # W1 keypoint part, block-diag
            const_spec(packed["w1a"].shape),       # W1 action part, block-diag
            const_spec(packed["b1"].shape),        # b1 (tiled P times)
            const_spec(packed["w2"].shape),        # W2 small (128,128) block-diag
            const_spec(packed["b2"].shape),        # b2 (tiled g times)
            const_spec(packed["w3"].shape),        # W3 block-diag
            const_spec(packed["b3"].shape),        # b3 (tiled P times)
        ],
        out_specs=row_spec(P * Dk),
        compiler_params=pltpu.CompilerParams(
            dimension_semantics=("parallel",),
            vmem_limit_bytes=32 * 1024 * 1024),
    )(kp_packed, act_packed, packed["w1k"], packed["w1a"], packed["b1"],
      packed["w2"], packed["b2"], packed["w3"], packed["b3"])

    # Free unpack, drop padded rows, back to (B, T-1, K, 2).
    out_rows = out_packed.reshape(N_pad, Dk)[:N]
    return out_rows.reshape(B, T - 1, K, 2)


def init_params(num_keypoints, action_dim, hidden=32, seed=0):
    """Deterministic synthetic parameters matching nn.Linear shapes ((in, out) layout)."""
    d_in = 2 * num_keypoints + action_dim
    d_out = 2 * num_keypoints
    key = jax.random.PRNGKey(seed)
    ks = jax.random.split(key, 6)
    scale = 0.1
    return {
        "w1": scale * jax.random.normal(ks[0], (d_in, hidden), jnp.float32),
        "b1": scale * jax.random.normal(ks[1], (hidden,), jnp.float32),
        "w2": scale * jax.random.normal(ks[2], (hidden, hidden), jnp.float32),
        "b2": scale * jax.random.normal(ks[3], (hidden,), jnp.float32),
        "w3": scale * jax.random.normal(ks[4], (hidden, d_out), jnp.float32),
        "b3": scale * jax.random.normal(ks[5], (d_out,), jnp.float32),
    }


def _reference_forward(keyp_seq, action_seq, params):
    """Pure-JAX f32 reference, mathematically identical to the PyTorch loop."""
    B, T, K, _ = keyp_seq.shape
    keyp = keyp_seq[:, :T - 1].reshape(B, T - 1, 2 * K)
    x = jnp.concatenate([keyp, action_seq[:, :T - 1]], axis=-1)
    x = jax.nn.relu(x @ params["w1"] + params["b1"])
    x = jax.nn.relu(x @ params["w2"] + params["b2"])
    x = x @ params["w3"] + params["b3"]
    return (x + keyp).reshape(B, T - 1, K, 2)


if __name__ == "__main__":
    K, A = 4, 4
    params = init_params(num_keypoints=K, action_dim=A, hidden=32, seed=0)

    # One-time weight packing (block-diag replicas + tiled biases).
    packed_f32, meta_f32 = pack_params(params, compute_dtype=jnp.float32)
    packed_bf16, meta_bf16 = pack_params(params, compute_dtype=jnp.bfloat16)

    # Small case (single grid step) and a larger case (multi-step grid).
    for (B, T) in [(2, 8), (2, 101)]:
        key = jax.random.PRNGKey(0)
        k1, k2 = jax.random.split(key)
        keyp_seq = jax.random.normal(k1, (B, T, K, 2), jnp.float32)
        action_seq = jax.random.normal(k2, (B, T, A), jnp.float32)
        ref = _reference_forward(keyp_seq, action_seq, params)

        # f32 compute path: tight against the reference.
        out_f32 = jax.block_until_ready(
            keyp_predictor_forward(keyp_seq, action_seq, packed_f32, meta_f32))
        assert out_f32.shape == (B, T - 1, K, 2), out_f32.shape
        assert jnp.allclose(out_f32, ref, atol=1e-5, rtol=1e-5), f"f32 mismatch B={B} T={T}"

        # Default bf16-MXU path (bf16 epilogues auto-enabled on v6e/v7x only).
        out = jax.block_until_ready(
            keyp_predictor_forward(keyp_seq, action_seq, packed_bf16, meta_bf16))
        assert out.shape == (B, T - 1, K, 2), out.shape
        assert jnp.allclose(out, ref, atol=3e-2, rtol=3e-2), f"bf16 mismatch B={B} T={T}"

    print("KERNEL_OK")
</pallas_src>

<mosaic_0001>
module attributes {stable_mosaic.version = 11 : i64} {
  func.func @_mlp_kernel(%arg0: i32, %arg1: memref<8x128xf32, #tpu.memory_space<vmem>>, %arg2: memref<8x64xf32, #tpu.memory_space<vmem>>, %arg3: memref<128x512xf32, #tpu.memory_space<vmem>>, %arg4: memref<64x512xf32, #tpu.memory_space<vmem>>, %arg5: memref<1x512xf32, #tpu.memory_space<vmem>>, %arg6: memref<128x128xf32, #tpu.memory_space<vmem>>, %arg7: memref<1x128xf32, #tpu.memory_space<vmem>>, %arg8: memref<512x128xf32, #tpu.memory_space<vmem>>, %arg9: memref<1x128xf32, #tpu.memory_space<vmem>>, %arg10: memref<8x128xf32, #tpu.memory_space<vmem>>) attributes {dimension_semantics = [#tpu.dimension_semantics<parallel>], iteration_bounds = array<i64: 1>, scalar_prefetch = 0 : i64, scratch_operands = 0 : i64, tpu.core_type = #tpu.core_type<tc>, window_params = [{transform_indices = @transform_0, window_bounds = array<i64: 8, 128>}, {transform_indices = @transform_1, window_bounds = array<i64: 8, 64>}, {pipeline_mode = #tpu.pipeline_mode<synchronous>, transform_indices = @transform_2, window_bounds = array<i64: 128, 512>}, {pipeline_mode = #tpu.pipeline_mode<synchronous>, transform_indices = @transform_3, window_bounds = array<i64: 64, 512>}, {pipeline_mode = #tpu.pipeline_mode<synchronous>, transform_indices = @transform_4, window_bounds = array<i64: 1, 512>}, {pipeline_mode = #tpu.pipeline_mode<synchronous>, transform_indices = @transform_5, window_bounds = array<i64: 128, 128>}, {pipeline_mode = #tpu.pipeline_mode<synchronous>, transform_indices = @transform_6, window_bounds = array<i64: 1, 128>}, {pipeline_mode = #tpu.pipeline_mode<synchronous>, transform_indices = @transform_7, window_bounds = array<i64: 512, 128>}, {pipeline_mode = #tpu.pipeline_mode<synchronous>, transform_indices = @transform_8, window_bounds = array<i64: 1, 128>}, {transform_indices = @transform_9, window_bounds = array<i64: 8, 128>}]} {
    %c0 = arith.constant 0 : index
    %c0_0 = arith.constant 0 : index
    %0 = vector.load %arg1[%c0, %c0_0] : memref<8x128xf32, #tpu.memory_space<vmem>>, vector<8x128xf32>
    %c0_1 = arith.constant 0 : index
    %c0_2 = arith.constant 0 : index
    %1 = vector.load %arg3[%c0_1, %c0_2] : memref<128x512xf32, #tpu.memory_space<vmem>>, vector<128x512xf32>
    %cst = arith.constant dense<0.000000e+00> : vector<8x512xf32>
    %2 = tpu.matmul %0, %1, %cst {dimension_numbers = #tpu.dot_dimension_numbers<[1], [0], [0], [1], [0, 0, 1, 1], [], []>} : vector<8x128xf32>, vector<128x512xf32>, vector<8x512xf32> -> vector<8x512xf32>
    %c0_3 = arith.constant 0 : index
    %c0_4 = arith.constant 0 : index
    %3 = vector.load %arg2[%c0_3, %c0_4] : memref<8x64xf32, #tpu.memory_space<vmem>>, vector<8x64xf32>
    %c0_5 = arith.constant 0 : index
    %c0_6 = arith.constant 0 : index
    %4 = vector.load %arg4[%c0_5, %c0_6] : memref<64x512xf32, #tpu.memory_space<vmem>>, vector<64x512xf32>
    %cst_7 = arith.constant dense<0.000000e+00> : vector<8x512xf32>
    %5 = tpu.matmul %3, %4, %cst_7 {dimension_numbers = #tpu.dot_dimension_numbers<[1], [0], [0], [1], [0, 0, 1, 1], [], []>} : vector<8x64xf32>, vector<64x512xf32>, vector<8x512xf32> -> vector<8x512xf32>
    %6 = arith.addf %2, %5 : vector<8x512xf32>
    %c0_8 = arith.constant 0 : index
    %c0_9 = arith.constant 0 : index
    %7 = vector.load %arg5[%c0_8, %c0_9] : memref<1x512xf32, #tpu.memory_space<vmem>>, vector<1x512xf32>
    %8 = vector.broadcast %7 : vector<1x512xf32> to vector<8x512xf32>
    %9 = arith.addf %6, %8 : vector<8x512xf32>
    %cst_10 = arith.constant 0.000000e+00 : f32
    %10 = vector.broadcast %cst_10 : f32 to vector<8x512xf32>
    %11 = arith.maximumf %9, %10 : vector<8x512xf32>
    %c0_11 = arith.constant 0 : index
    %c0_12 = arith.constant 0 : index
    %12 = vector.load %arg6[%c0_11, %c0_12] : memref<128x128xf32, #tpu.memory_space<vmem>>, vector<128x128xf32>
    %c0_13 = arith.constant 0 : index
    %c0_14 = arith.constant 0 : index
    %13 = vector.load %arg7[%c0_13, %c0_14] : memref<1x128xf32, #tpu.memory_space<vmem>>, vector<1x128xf32>
    %14 = vector.extract_strided_slice %11 {offsets = [0, 0], sizes = [8, 128], strides = [1, 1]} : vector<8x512xf32> to vector<8x128xf32>
    %cst_15 = arith.constant dense<0.000000e+00> : vector<8x128xf32>
    %15 = tpu.matmul %14, %12, %cst_15 {dimension_numbers = #tpu.dot_dimension_numbers<[1], [0], [0], [1], [0, 0, 1, 1], [], []>} : vector<8x128xf32>, vector<128x128xf32>, vector<8x128xf32> -> vector<8x128xf32>
    %16 = vector.broadcast %13 : vector<1x128xf32> to vector<8x128xf32>
    %17 = arith.addf %15, %16 : vector<8x128xf32>
    %cst_16 = arith.constant 0.000000e+00 : f32
    %18 = vector.broadcast %cst_16 : f32 to vector<8x128xf32>
    %19 = arith.maximumf %17, %18 : vector<8x128xf32>
    %c0_17 = arith.constant 0 : index
    %c0_18 = arith.constant 0 : index
    %20 = vector.load %arg8[%c0_17, %c0_18] : memref<512x128xf32, #tpu.memory_space<vmem>>, vector<128x128xf32>
    %cst_19 = arith.constant dense<0.000000e+00> : vector<8x128xf32>
    %21 = tpu.matmul %19, %20, %cst_19 {dimension_numbers = #tpu.dot_dimension_numbers<[1], [0], [0], [1], [0, 0, 1, 1], [], []>} : vector<8x128xf32>, vector<128x128xf32>, vector<8x128xf32> -> vector<8x128xf32>
    %22 = vector.extract_strided_slice %11 {offsets = [0, 128], sizes = [8, 128], strides = [1, 1]} : vector<8x512xf32> to vector<8x128xf32>
    %cst_20 = arith.constant dense<0.000000e+00> : vector<8x128xf32>
    %23 = tpu.matmul %22, %12, %cst_20 {dimension_numbers = #tpu.dot_dimension_numbers<[1], [0], [0], [1], [0, 0, 1, 1], [], []>} : vector<8x128xf32>, vector<128x128xf32>, vector<8x128xf32> -> vector<8x128xf32>
    %24 = vector.broadcast %13 : vector<1x128xf32> to vector<8x128xf32>
    %25 = arith.addf %23, %24 : vector<8x128xf32>
    %cst_21 = arith.constant 0.000000e+00 : f32
    %26 = vector.broadcast %cst_21 : f32 to vector<8x128xf32>
    %27 = arith.maximumf %25, %26 : vector<8x128xf32>
    %c128 = arith.constant 128 : index
    %c0_22 = arith.constant 0 : index
    %28 = vector.load %arg8[%c128, %c0_22] : memref<512x128xf32, #tpu.memory_space<vmem>>, vector<128x128xf32>
    %cst_23 = arith.constant dense<0.000000e+00> : vector<8x128xf32>
    %29 = tpu.matmul %27, %28, %cst_23 {dimension_numbers = #tpu.dot_dimension_numbers<[1], [0], [0], [1], [0, 0, 1, 1], [], []>} : vector<8x128xf32>, vector<128x128xf32>, vector<8x128xf32> -> vector<8x128xf32>
    %30 = arith.addf %21, %29 : vector<8x128xf32>
    %31 = vector.extract_strided_slice %11 {offsets = [0, 256], sizes = [8, 128], strides = [1, 1]} : vector<8x512xf32> to vector<8x128xf32>
    %cst_24 = arith.constant dense<0.000000e+00> : vector<8x128xf32>
    %32 = tpu.matmul %31, %12, %cst_24 {dimension_numbers = #tpu.dot_dimension_numbers<[1], [0], [0], [1], [0, 0, 1, 1], [], []>} : vector<8x128xf32>, vector<128x128xf32>, vector<8x128xf32> -> vector<8x128xf32>
    %33 = vector.broadcast %13 : vector<1x128xf32> to vector<8x128xf32>
    %34 = arith.addf %32, %33 : vector<8x128xf32>
    %cst_25 = arith.constant 0.000000e+00 : f32
    %35 = vector.broadcast %cst_25 : f32 to vector<8x128xf32>
    %36 = arith.maximumf %34, %35 : vector<8x128xf32>
    %c256 = arith.constant 256 : index
    %c0_26 = arith.constant 0 : index
    %37 = vector.load %arg8[%c256, %c0_26] : memref<512x128xf32, #tpu.memory_space<vmem>>, vector<128x128xf32>
    %cst_27 = arith.constant dense<0.000000e+00> : vector<8x128xf32>
    %38 = tpu.matmul %36, %37, %cst_27 {dimension_numbers = #tpu.dot_dimension_numbers<[1], [0], [0], [1], [0, 0, 1, 1], [], []>} : vector<8x128xf32>, vector<128x128xf32>, vector<8x128xf32> -> vector<8x128xf32>
    %39 = arith.addf %30, %38 : vector<8x128xf32>
    %40 = vector.extract_strided_slice %11 {offsets = [0, 384], sizes = [8, 128], strides = [1, 1]} : vector<8x512xf32> to vector<8x128xf32>
    %cst_28 = arith.constant dense<0.000000e+00> : vector<8x128xf32>
    %41 = tpu.matmul %40, %12, %cst_28 {dimension_numbers = #tpu.dot_dimension_numbers<[1], [0], [0], [1], [0, 0, 1, 1], [], []>} : vector<8x128xf32>, vector<128x128xf32>, vector<8x128xf32> -> vector<8x128xf32>
    %42 = vector.broadcast %13 : vector<1x128xf32> to vector<8x128xf32>
    %43 = arith.addf %41, %42 : vector<8x128xf32>
    %cst_29 = arith.constant 0.000000e+00 : f32
    %44 = vector.broadcast %cst_29 : f32 to vector<8x128xf32>
    %45 = arith.maximumf %43, %44 : vector<8x128xf32>
    %c384 = arith.constant 384 : index
    %c0_30 = arith.constant 0 : index
    %46 = vector.load %arg8[%c384, %c0_30] : memref<512x128xf32, #tpu.memory_space<vmem>>, vector<128x128xf32>
    %cst_31 = arith.constant dense<0.000000e+00> : vector<8x128xf32>
    %47 = tpu.matmul %45, %46, %cst_31 {dimension_numbers = #tpu.dot_dimension_numbers<[1], [0], [0], [1], [0, 0, 1, 1], [], []>} : vector<8x128xf32>, vector<128x128xf32>, vector<8x128xf32> -> vector<8x128xf32>
    %48 = arith.addf %39, %47 : vector<8x128xf32>
    %c0_32 = arith.constant 0 : index
    %c0_33 = arith.constant 0 : index
    %49 = vector.load %arg9[%c0_32, %c0_33] : memref<1x128xf32, #tpu.memory_space<vmem>>, vector<1x128xf32>
    %50 = vector.broadcast %49 : vector<1x128xf32> to vector<8x128xf32>
    %51 = arith.addf %48, %50 : vector<8x128xf32>
    %52 = arith.addf %51, %0 : vector<8x128xf32>
    %c0_34 = arith.constant 0 : index
    %c0_35 = arith.constant 0 : index
    %53 = vector.load %arg10[%c0_34, %c0_35] : memref<8x128xf32, #tpu.memory_space<vmem>>, vector<8x128xf32>
    tpu.vector_store %arg10[%c0_34, %c0_35], %52 {strides = array<i32>} : memref<8x128xf32, #tpu.memory_space<vmem>>, vector<8x128xf32>,
    return
  }
  func.func @transform_0(%arg0: i32) -> (i32, i32) {
    %c0_i32 = arith.constant 0 : i32
    %c0_i32_0 = arith.constant 0 : i32
    return %arg0, %c0_i32 : i32, i32
  }
  func.func @transform_1(%arg0: i32) -> (i32, i32) {
    %c0_i32 = arith.constant 0 : i32
    %c0_i32_0 = arith.constant 0 : i32
    return %arg0, %c0_i32 : i32, i32
  }
  func.func @transform_2(%arg0: i32) -> (i32, i32) {
    %c0_i32 = arith.constant 0 : i32
    %c0_i32_0 = arith.constant 0 : i32
    %c0_i32_1 = arith.constant 0 : i32
    return %c0_i32, %c0_i32_0 : i32, i32
  }
  func.func @transform_3(%arg0: i32) -> (i32, i32) {
    %c0_i32 = arith.constant 0 : i32
    %c0_i32_0 = arith.constant 0 : i32
    %c0_i32_1 = arith.constant 0 : i32
    return %c0_i32, %c0_i32_0 : i32, i32
  }
  func.func @transform_4(%arg0: i32) -> (i32, i32) {
    %c0_i32 = arith.constant 0 : i32
    %c0_i32_0 = arith.constant 0 : i32
    %c0_i32_1 = arith.constant 0 : i32
    return %c0_i32, %c0_i32_0 : i32, i32
  }
  func.func @transform_5(%arg0: i32) -> (i32, i32) {
    %c0_i32 = arith.constant 0 : i32
    %c0_i32_0 = arith.constant 0 : i32
    %c0_i32_1 = arith.constant 0 : i32
    return %c0_i32, %c0_i32_0 : i32, i32
  }
  func.func @transform_6(%arg0: i32) -> (i32, i32) {
    %c0_i32 = arith.constant 0 : i32
    %c0_i32_0 = arith.constant 0 : i32
    %c0_i32_1 = arith.constant 0 : i32
    return %c0_i32, %c0_i32_0 : i32, i32
  }
  func.func @transform_7(%arg0: i32) -> (i32, i32) {
    %c0_i32 = arith.constant 0 : i32
    %c0_i32_0 = arith.constant 0 : i32
    %c0_i32_1 = arith.constant 0 : i32
    return %c0_i32, %c0_i32_0 : i32, i32
  }
  func.func @transform_8(%arg0: i32) -> (i32, i32) {
    %c0_i32 = arith.constant 0 : i32
    %c0_i32_0 = arith.constant 0 : i32
    %c0_i32_1 = arith.constant 0 : i32
    return %c0_i32, %c0_i32_0 : i32, i32
  }
  func.func @transform_9(%arg0: i32) -> (i32, i32) {
    %c0_i32 = arith.constant 0 : i32
    %c0_i32_0 = arith.constant 0 : i32
    return %arg0, %c0_i32 : i32, i32
  }
}

</mosaic_0001>

<bundles_post_ra>
// kernel: tpu_custom_call.1
= control target key start
LH: loop header
LB: loop body
LE: loop exit
PB: predicated region body
PF: predicated region fallthrough
CT: control target
= control target key end

     0   :  { %14 = vsyncpa [#allocation3], 0  ;;  %s2160_s0 = inlined_call_operand.hbm [shape: f32[8,128], index: 0, kind: input, shape index: {}]   ;;  %s2161_s1 = inlined_call_operand.hbm [shape: f32[8,64], index: 1, kind: input, shape index: {}]   ;;  %s2162_s2 = inlined_call_operand.hbm [shape: f32[128,512], index: 2, kind: input, shape index: {}]   ;;  %s2163_s3 = inlined_call_operand.hbm [shape: f32[64,512], index: 3, kind: input, shape index: {}]   ;;  %s2164_s4 = inlined_call_operand.vmem [shape: f32[1,512], index: 4, kind: input, shape index: {}]   ;;  %s2165_s5 = inlined_call_operand.hbm [shape: f32[128,128], index: 5, kind: input, shape index: {}]   ;;  %s2166_s6 = inlined_call_operand.vmem [shape: f32[1,128], index: 6, kind: input, shape index: {}]   ;;  %s2167_s7 = inlined_call_operand.hbm [shape: f32[512,128], index: 7, kind: input, shape index: {}]   ;;  %s2168_s8 = inlined_call_operand.vmem [shape: f32[1,128], index: 8, kind: input, shape index: {}]   ;;  %s2169_s9 = inlined_call_operand.hbm [shape: f32[8,128], index: 9, kind: output, shape index: {}]  }
   0x1   :  { %15 = vsyncpa [#allocation6], 0 }
   0x2   :  { %16 = vsyncpa [#allocation9], 0 }
   0x3   :  { %17 = vsyncpa [#allocation12], 0 }
   0x4   :  { %18 = vsyncpa [#allocation4], 0  ;;  %s1791_s30 = smov [#allocation5]  }
   0x5   :  { %s35_s10 = sshll.u32 %s1791_s30, 4  ;;  %s36_s10 = int_to_ptr.vmem [resolvable:$true] %s35_s10 }
   0x6   :  { %s1649_s11 = scalar_lea.vmem %s36_s10, 128  ;;  %p1654_p1 = scmp.lt.s32.totalorder %s36_s10, %s36_s10 }
   0x7   :  { %p1650_p0 = scmp.ne.s32.totalorder %s36_s10, %s1649_s11  ;;  %p1655_p2 = scmp.lt.s32.totalorder %s1649_s11, %s1649_s11 }
   0x9   :  { %p1656_p3 = por %p1655_p2, %p1654_p1 }
   0xb   :  { %p1657_p4 = pnand %p1656_p3, %p1650_p0 }
   0xd   :  { %1660 = shalt.err (!%p1657_p4)
}
   0xe   :  { %38 = dma.hbm_to_vmem [thread:$0]  %s2161_s1, 128, %s36_s10, [#allocation6]  }
   0xf   :  { %s1792_s14 = smov [#allocation8]   ;;  %s1793_s16 = smov [#allocation2]  }
  0x10   :  { %s56_s15 = sshll.u32 %s1792_s14, 4  ;;  %s25_s17 = sshll.u32 %s1793_s16, 4  ;;  %s57_s15 = int_to_ptr.vmem [resolvable:$true] %s56_s15  ;;  %s26_s17 = int_to_ptr.vmem [resolvable:$true] %s25_s17 }
  0x11   :  { %s1669_s18 = scalar_lea.vmem %s57_s15, 4096  ;;  %p1674_p6 = scmp.lt.s32.totalorder %s57_s15, %s57_s15 }
  0x12   :  { %p1670_p5 = scmp.ne.s32.totalorder %s57_s15, %s1669_s18  ;;  %p1675_p7 = scmp.lt.s32.totalorder %s1669_s18, %s1669_s18 }
  0x14   :  { %p1676_p8 = por %p1675_p7, %p1674_p6 }
  0x16   :  { %p1677_p9 = pnand %p1676_p8, %p1670_p5 }
  0x18   :  { %1680 = shalt.err (!%p1677_p9)
}
  0x19   :  { %s1794_s19 = smov 512   ;;  %s1795_s20 = smov 32  }
  0x1a   :  { %62 = dma.hbm_to_vmem [thread:$0]  %s2163_s3, 4096, %s57_s15, [#allocation9], %s1794_s19, %s1794_s19, %s1795_s20  }
  0x1b   :  { %s1689_s1 = scalar_lea.vmem %s26_s17, 128  ;;  %p1694_p11 = scmp.lt.s32.totalorder %s26_s17, %s26_s17 }
  0x1c   :  { %p1690_p10 = scmp.ne.s32.totalorder %s26_s17, %s1689_s1  ;;  %p1695_p12 = scmp.lt.s32.totalorder %s1689_s1, %s1689_s1 }
  0x1e   :  { %p1696_p13 = por %p1695_p12, %p1694_p11 }
  0x20   :  { %p1697_p0 = pnand %p1696_p13, %p1690_p10 }
  0x22   :  { %1700 = shalt.err (!%p1697_p0)
}
  0x23   :  { %28 = dma.hbm_to_vmem [thread:$0]  %s2160_s0, 128, %s26_s17, [#allocation3]  }
  0x24   :  { %s1796_s25 = smov [#allocation7]   ;;  %s1797_s27 = smov [#allocation10]  }
  0x25   :  { %s44_s26 = sshll.u32 %s1796_s25, 4  ;;  %s70_s28 = sshll.u32 %s1797_s27, 4  ;;  %s45_s26 = int_to_ptr.vmem [resolvable:$true] %s44_s26  ;;  %s71_s28 = int_to_ptr.vmem [resolvable:$true] %s70_s28 }
  0x26   :  { %s1709_s29 = scalar_lea.vmem %s45_s26, 8192  ;;  %p1714_p2 = scmp.lt.s32.totalorder %s45_s26, %s45_s26 }
  0x27   :  { %p1710_p1 = scmp.ne.s32.totalorder %s45_s26, %s1709_s29  ;;  %p1715_p3 = scmp.lt.s32.totalorder %s1709_s29, %s1709_s29 }
  0x29   :  { %p1716_p4 = por %p1715_p3, %p1714_p2 }
  0x2b   :  { %p1717_p5 = pnand %p1716_p4, %p1710_p1 }
  0x2d   :  { %1720 = shalt.err (!%p1717_p5)
}
  0x2e   :  { %50 = dma.hbm_to_vmem [thread:$0]  %s2162_s2, 8192, %s45_s26, [#allocation6], %s1794_s19, %s1794_s19, %s1795_s20  }
  0x2f   :  { %s1729_s10 = scalar_lea.vmem %s71_s28, 2048  ;;  %p1734_p7 = scmp.lt.s32.totalorder %s71_s28, %s71_s28 }
  0x30   :  { %p1730_p6 = scmp.ne.s32.totalorder %s71_s28, %s1729_s10  ;;  %p1735_p8 = scmp.lt.s32.totalorder %s1729_s10, %s1729_s10 }
  0x32   :  { %p1736_p9 = por %p1735_p8, %p1734_p7 }
  0x34   :  { %p1737_p10 = pnand %p1736_p9, %p1730_p6 }
  0x36   :  { %1740 = shalt.err (!%p1737_p10)
}
  0x37   :  { %s1798_s0 = smov 128   ;;  %s1799_s11 = smov 8  }
  0x38   :  { %76 = dma.hbm_to_vmem [thread:$0]  %s2165_s5, 2048, %s71_s28, [#allocation9], %s1798_s0, %s1798_s0, %s1799_s11  }
  0x39   :  { %s1800_s14 = smov [#allocation11]  }
  0x3a   :  { %s84_s15 = sshll.u32 %s1800_s14, 4  ;;  %s85_s15 = int_to_ptr.vmem [resolvable:$true] %s84_s15 }
  0x3b   :  { %s1749_s16 = scalar_lea.vmem %s85_s15, 8192  ;;  %p1754_p12 = scmp.lt.s32.totalorder %s85_s15, %s85_s15 }
  0x3c   :  { %p1750_p11 = scmp.ne.s32.totalorder %s85_s15, %s1749_s16  ;;  %p1755_p13 = scmp.lt.s32.totalorder %s1749_s16, %s1749_s16 }
  0x3e   :  { %p1756_p0 = por %p1755_p13, %p1754_p12 }
  0x40   :  { %p1757_p1 = pnand %p1756_p0, %p1750_p11 }
  0x42   :  { %1760 = shalt.err (!%p1757_p1)
}
  0x43   :  { %90 = dma.hbm_to_vmem [thread:$0]  %s2167_s7, 8192, %s85_s15, [#allocation12], %s1798_s0, %s1798_s0, %s1799_s11  }
  0x44   :  { %1781 = dma.done.wait [#allocation3], 128  }
  0x45   :  { %1782 = vsyncadd [#allocation3], 4294967168 }
  0x46   :  { %1783 = dma.done.wait [#allocation6], 8320  }
  0x47   :  { %1784 = vsyncadd [#allocation6], 4294958976 }
  0x48   :  { %1785 = dma.done.wait [#allocation9], 6144  }
  0x49   :  { %1786 = vsyncadd [#allocation9], 4294961152 }
  0x4a   :  { %1787 = dma.done.wait [#allocation12], 8192  }
  0x4b   :  { %1788 = vsyncadd [#allocation12], 4294959104  ;;  %v1801_v0 = vmov 0.0   ;;  %v206_v1 = vld [vmem:[#allocation8 + $0xe8] sm:$0xff]  ;;  %v205_v2 = vld [vmem:[#allocation8 + $0xe0] sm:$0xff]  ;;  %vm209_vm0 = vcmask 523264  }
  0x4c   :  { %277 = vmatprep.mubr.f32.mxu0 %v1801_v0  ;;  %348 = vmatprep.mubr.f32.mxu1 %v1801_v0  ;;  %v202_v3 = vld [vmem:[#allocation8 + $0xc8] sm:$0xff]  ;;  %v201_v4 = vld [vmem:[#allocation8 + $0xc0] sm:$0xff]  ;;  %v1874_v17 = vld [vmem:[#allocation5] sm:$0xff]  ;;  %vm1802_vm1 = vmmov 0   ;;  %s1803_s20 = smov [#allocation13]  }
  0x4d   :  { %229 = vmatprep.subr.mxu0 %v206_v1  ;;  %v198_v5 = vld [vmem:[#allocation8 + $0xa8] sm:$0xff]  ;;  %v197_v6 = vld [vmem:[#allocation8 + $0xa0] sm:$0xff]  ;;  %v208_v21 = vld [vmem:[#allocation8 + $0xf8] sm:$0xff]  ;;  %s1196_s21 = sshll.u32 %s1803_s20, 4  ;;  %s1197_s21 = int_to_ptr.vmem [resolvable:$true] %s1196_s21 }
  0x4e   :  { %230 = vmatpush1.msra.mxu0 %v205_v2  ;;  %v194_v7 = vld [vmem:[#allocation8 + $0x88] sm:$0xff]  ;;  %v193_v8 = vld [vmem:[#allocation8 + $0x80] sm:$0xff]  ;;  %v207_v23 = vld [vmem:[#allocation8 + $0xf0] sm:$0xff]  ;;  %300 = vmatprep.subr.mxu1 %v208_v21  ;;  %s1761_s22 = scalar_lea.vmem %s1197_s21, 128  ;;  %p1766_p3 = scmp.lt.s32.totalorder %s1197_s21, %s1197_s21 }
  0x4f   :  { %231 = vmatprep.subr.mxu0 %v202_v3  ;;  %v190_v9 = vld [vmem:[#allocation8 + $0x68] sm:$0xff]  ;;  %v189_v10 = vld [vmem:[#allocation8 + $0x60] sm:$0xff]  ;;  %v204_v25 = vld [vmem:[#allocation8 + $0xd8] sm:$0xff]  ;;  %301 = vmatpush1.msra.mxu1 %v207_v23  ;;  %p1762_p2 = scmp.ne.s32.totalorder %s1197_s21, %s1761_s22  ;;  %p1767_p4 = scmp.lt.s32.totalorder %s1761_s22, %s1761_s22 }
  0x50   :  { %232 = vmatpush1.msra.mxu0 %v201_v4  ;;  %v186_v11 = vld [vmem:[#allocation8 + $0x48] sm:$0xff]  ;;  %v185_v12 = vld [vmem:[#allocation8 + $0x40] sm:$0xff]  ;;  %v203_v27 = vld [vmem:[#allocation8 + $0xd0] sm:$0xff]  ;;  %302 = vmatprep.subr.mxu1 %v204_v25 }
  0x51   :  { %233 = vmatprep.subr.mxu0 %v198_v5  ;;  %v182_v13 = vld [vmem:[#allocation8 + $0x28] sm:$0xff]  ;;  %v181_v14 = vld [vmem:[#allocation8 + $0x20] sm:$0xff]  ;;  %v200_v29 = vld [vmem:[#allocation8 + $0xb8] sm:$0xff]  ;;  %303 = vmatpush1.msra.mxu1 %v203_v27  ;;  %p1768_p5 = por %p1767_p4, %p1766_p3 }
  0x52   :  { %234 = vmatpush1.msra.mxu0 %v197_v6  ;;  %v178_v15 = vld [vmem:[#allocation8 + $0x8] sm:$0xff]  ;;  %v177_v16 = vld [vmem:[#allocation8] sm:$0xff]  ;;  %v199_v31 = vld [vmem:[#allocation8 + $0xb0] sm:$0xff]  ;;  %304 = vmatprep.subr.mxu1 %v200_v29 }
  0x53   :  { %235 = vmatprep.subr.mxu0 %v194_v7  ;;  %v173_v18 = vld [vmem:[#allocation7 + $0x1e8] sm:$0xff]  ;;  %v172_v19 = vld [vmem:[#allocation7 + $0x1e0] sm:$0xff]  ;;  %v196_v33 = vld [vmem:[#allocation8 + $0x98] sm:$0xff]  ;;  %305 = vmatpush1.msra.mxu1 %v199_v31  ;;  %p1769_p6 = pnand %p1768_p5, %p1762_p2 }
  0x54   :  { %236 = vmatpush1.msra.mxu0 %v193_v8  ;;  %v169_v20 = vld [vmem:[#allocation7 + $0x1c8] sm:$0xff]  ;;  %v168_v22 = vld [vmem:[#allocation7 + $0x1c0] sm:$0xff]  ;;  %v195_v35 = vld [vmem:[#allocation8 + $0x90] sm:$0xff]  ;;  %306 = vmatprep.subr.mxu1 %v196_v33 }
  0x55   :  { %237 = vmatprep.subr.mxu0 %v190_v9  ;;  %v165_v24 = vld [vmem:[#allocation7 + $0x1a8] sm:$0xff]  ;;  %v164_v26 = vld [vmem:[#allocation7 + $0x1a0] sm:$0xff]  ;;  %v192_v37 = vld [vmem:[#allocation8 + $0x78] sm:$0xff]  ;;  %307 = vmatpush1.msra.mxu1 %v195_v35 }
  0x56   :  { %238 = vmatpush1.msra.mxu0 %v189_v10  ;;  %v161_v28 = vld [vmem:[#allocation7 + $0x188] sm:$0xff]  ;;  %v160_v30 = vld [vmem:[#allocation7 + $0x180] sm:$0xff]  ;;  %v191_v39 = vld [vmem:[#allocation8 + $0x70] sm:$0xff]  ;;  %308 = vmatprep.subr.mxu1 %v192_v37 }
  0x57   :  { %239 = vmatprep.subr.mxu0 %v186_v11  ;;  %v157_v32 = vld [vmem:[#allocation7 + $0x168] sm:$0xff]  ;;  %v156_v34 = vld [vmem:[#allocation7 + $0x160] sm:$0xff]  ;;  %v188_v41 = vld [vmem:[#allocation8 + $0x58] sm:$0xff]  ;;  %309 = vmatpush1.msra.mxu1 %v191_v39 }
  0x58   :  { %240 = vmatpush1.msra.mxu0 %v185_v12  ;;  %v153_v36 = vld [vmem:[#allocation7 + $0x148] sm:$0xff]  ;;  %v152_v38 = vld [vmem:[#allocation7 + $0x140] sm:$0xff]  ;;  %v187_v43 = vld [vmem:[#allocation8 + $0x50] sm:$0xff]  ;;  %310 = vmatprep.subr.mxu1 %v188_v41 }
  0x59   :  { %241 = vmatprep.subr.mxu0 %v182_v13  ;;  %v149_v40 = vld [vmem:[#allocation7 + $0x128] sm:$0xff]  ;;  %v148_v42 = vld [vmem:[#allocation7 + $0x120] sm:$0xff]  ;;  %v184_v45 = vld [vmem:[#allocation8 + $0x38] sm:$0xff]  ;;  %311 = vmatpush1.msra.mxu1 %v187_v43 }
  0x5a   :  { %242 = vmatpush1.msra.mxu0 %v181_v14  ;;  %v145_v44 = vld [vmem:[#allocation7 + $0x108] sm:$0xff]  ;;  %v144_v46 = vld [vmem:[#allocation7 + $0x100] sm:$0xff]  ;;  %v183_v47 = vld [vmem:[#allocation8 + $0x30] sm:$0xff]  ;;  %312 = vmatprep.subr.mxu1 %v184_v45 }
  0x5b   :  { %243 = vmatprep.subr.mxu0 %v178_v15  ;;  %v141_v48 = vld [vmem:[#allocation7 + $0xe8] sm:$0xff]  ;;  %v180_v49 = vld [vmem:[#allocation8 + $0x18] sm:$0xff]  ;;  %v140_v50 = vld [vmem:[#allocation7 + $0xe0] sm:$0xff]  ;;  %313 = vmatpush1.msra.mxu1 %v183_v47 }
  0x5c   :  { %244 = vmatpush1.msra.mxu0 %v177_v16  ;;  %v179_v51 = vld [vmem:[#allocation8 + $0x10] sm:$0xff]  ;;  %v137_v52 = vld [vmem:[#allocation7 + $0xc8] sm:$0xff]  ;;  %v175_v53 = vld [vmem:[#allocation7 + $0x1f8] sm:$0xff]  ;;  %314 = vmatprep.subr.mxu1 %v180_v49 }
  0x5d   :  { %1208 = vmatmul.mubr.msk.f32.vlgmr.msra.gmra.mxu0 %vm209_vm0, %v1874_v17  ;;  %355 = vmatprep.subr.mxu0 %v173_v18  ;;  %v136_v54 = vld [vmem:[#allocation7 + $0xc0] sm:$0xff]  ;;  %v133_v55 = vld [vmem:[#allocation7 + $0xa8] sm:$0xff]  ;;  %v174_v56 = vld [vmem:[#allocation7 + $0x1f0] sm:$0xff] }
  0x5e   :  { %356 = vmatpush1.msra.mxu0 %v172_v19  ;;  %419 = vmatprep.mubr.f32.mxu0 %v1801_v0  ;;  %v132_v57 = vld [vmem:[#allocation7 + $0xa0] sm:$0xff]  ;;  %v171_v58 = vld [vmem:[#allocation7 + $0x1d8] sm:$0xff]  ;;  %v129_v59 = vld [vmem:[#allocation7 + $0x88] sm:$0xff] }
  0x5f   :  { %357 = vmatprep.subr.mxu0 %v169_v20  ;;  %315 = vmatpush1.msra.mxu1 %v179_v51  ;;  %v170_v60 = vld [vmem:[#allocation7 + $0x1d0] sm:$0xff]  ;;  %v128_v61 = vld [vmem:[#allocation7 + $0x80] sm:$0xff]  ;;  %v167_v62 = vld [vmem:[#allocation7 + $0x1b8] sm:$0xff] }
  0x60   :  { %358 = vmatpush1.msra.mxu0 %v168_v22  ;;  %426 = vmatprep.subr.mxu1 %v175_v53  ;;  %v125_v63 = vld [vmem:[#allocation7 + $0x68] sm:$0xff]  ;;  %v166_v1 = vld [vmem:[#allocation7 + $0x1b0] sm:$0xff]  ;;  %v124_v2 = vld [vmem:[#allocation7 + $0x60] sm:$0xff] }
  0x61   :  { %359 = vmatprep.subr.mxu0 %v165_v24  ;;  %1209 = vmatmul.mubr.msk.f32.vlgmr.msra.gmra.mxu1 %vm209_vm0, %v1874_v17  ;;  %v163_v3 = vld [vmem:[#allocation7 + $0x198] sm:$0xff]  ;;  %v121_v4 = vld [vmem:[#allocation7 + $0x48] sm:$0xff]  ;;  %v162_v5 = vld [vmem:[#allocation7 + $0x190] sm:$0xff] }
  0x62   :  { %360 = vmatpush1.msra.mxu0 %v164_v26  ;;  %427 = vmatpush1.msra.mxu1 %v174_v56  ;;  %v120_v6 = vld [vmem:[#allocation7 + $0x40] sm:$0xff]  ;;  %v159_v7 = vld [vmem:[#allocation7 + $0x178] sm:$0xff]  ;;  %v117_v8 = vld [vmem:[#allocation7 + $0x28] sm:$0xff] }
  0x63   :  { %361 = vmatprep.subr.mxu0 %v161_v28  ;;  %428 = vmatprep.subr.mxu1 %v171_v58  ;;  %v158_v9 = vld [vmem:[#allocation7 + $0x170] sm:$0xff]  ;;  %v116_v10 = vld [vmem:[#allocation7 + $0x20] sm:$0xff]  ;;  %v155_v11 = vld [vmem:[#allocation7 + $0x158] sm:$0xff] }
  0x64   :  { %362 = vmatpush1.msra.mxu0 %v160_v30  ;;  %429 = vmatpush1.msra.mxu1 %v170_v60  ;;  %v113_v12 = vld [vmem:[#allocation7 + $0x8] sm:$0xff]  ;;  %v154_v13 = vld [vmem:[#allocation7 + $0x150] sm:$0xff]  ;;  %v112_v14 = vld [vmem:[#allocation7] sm:$0xff] }
  0x65   :  { %363 = vmatprep.subr.mxu0 %v157_v32  ;;  %430 = vmatprep.subr.mxu1 %v167_v62  ;;  %v151_v15 = vld [vmem:[#allocation7 + $0x138] sm:$0xff]  ;;  %v1881_v16 = vld [vmem:[#allocation2] sm:$0xff]  ;;  %v1902_v39 = vld [vmem:[#allocation10 + $0x60] sm:$0xff] }
  0x66   :  { %364 = vmatpush1.msra.mxu0 %v156_v34  ;;  %431 = vmatpush1.msra.mxu1 %v166_v1  ;;  %v150_v17 = vld [vmem:[#allocation7 + $0x130] sm:$0xff]  ;;  %v147_v18 = vld [vmem:[#allocation7 + $0x118] sm:$0xff]  ;;  %v1926_v43 = vld [vmem:[#allocation10 + $0x40] sm:$0xff] }
  0x67   :  { %365 = vmatprep.subr.mxu0 %v153_v36  ;;  %432 = vmatprep.subr.mxu1 %v163_v3  ;;  %v146_v19 = vld [vmem:[#allocation7 + $0x110] sm:$0xff]  ;;  %v143_v20 = vld [vmem:[#allocation7 + $0xf8] sm:$0xff]  ;;  %v1950_v47 = vld [vmem:[#allocation10 + $0x20] sm:$0xff] }
  0x68   :  { %366 = vmatpush1.msra.mxu0 %v152_v38  ;;  %433 = vmatpush1.msra.mxu1 %v162_v5  ;;  %v142_v21 = vld [vmem:[#allocation7 + $0xf0] sm:$0xff]  ;;  %v139_v22 = vld [vmem:[#allocation7 + $0xd8] sm:$0xff]  ;;  %v1896_v38 = vld [vmem:[#allocation10 + $0x68] sm:$0xff] }
  0x69   :  { %367 = vmatprep.subr.mxu0 %v149_v40  ;;  %434 = vmatprep.subr.mxu1 %v159_v7  ;;  %v138_v23 = vld [vmem:[#allocation7 + $0xd0] sm:$0xff]  ;;  %v135_v24 = vld [vmem:[#allocation7 + $0xb8] sm:$0xff]  ;;  %v1977_v51 = vld [vmem:[#allocation10] sm:$0xff] }
  0x6a   :  { %368 = vmatpush1.msra.mxu0 %v148_v42  ;;  %435 = vmatpush1.msra.mxu1 %v158_v9  ;;  %v134_v25 = vld [vmem:[#allocation7 + $0xb0] sm:$0xff]  ;;  %v131_v26 = vld [vmem:[#allocation7 + $0x98] sm:$0xff]  ;;  %v1920_v42 = vld [vmem:[#allocation10 + $0x48] sm:$0xff] }
  0x6b   :  { %369 = vmatprep.subr.mxu0 %v145_v44  ;;  %436 = vmatprep.subr.mxu1 %v155_v11  ;;  %v130_v27 = vld [vmem:[#allocation7 + $0x90] sm:$0xff]  ;;  %v127_v28 = vld [vmem:[#allocation7 + $0x78] sm:$0xff] }
  0x6c   :  { %370 = vmatpush1.msra.mxu0 %v144_v46  ;;  %437 = vmatpush1.msra.mxu1 %v154_v13  ;;  %v126_v29 = vld [vmem:[#allocation7 + $0x70] sm:$0xff]  ;;  %v123_v30 = vld [vmem:[#allocation7 + $0x58] sm:$0xff]  ;;  %v1944_v46 = vld [vmem:[#allocation10 + $0x28] sm:$0xff] }
  0x6d   :  { %371 = vmatprep.subr.mxu0 %v141_v48  ;;  %438 = vmatprep.subr.mxu1 %v151_v15  ;;  %v122_v31 = vld [vmem:[#allocation7 + $0x50] sm:$0xff]  ;;  %v119_v32 = vld [vmem:[#allocation7 + $0x38] sm:$0xff] }
  0x6e   :  { %372 = vmatpush1.msra.mxu0 %v140_v50  ;;  %439 = vmatpush1.msra.mxu1 %v150_v17  ;;  %v118_v33 = vld [vmem:[#allocation7 + $0x30] sm:$0xff]  ;;  %v115_v34 = vld [vmem:[#allocation7 + $0x18] sm:$0xff]  ;;  %v1971_v50 = vld [vmem:[#allocation10 + $0x8] sm:$0xff] }
  0x6f   :  { %373 = vmatprep.subr.mxu0 %v137_v52  ;;  %440 = vmatprep.subr.mxu1 %v147_v18  ;;  %v114_v35 = vld [vmem:[#allocation7 + $0x10] sm:$0xff]  ;;  %v1888_v36 = vld [vmem:[#allocation10 + $0x78] sm:$0xff]  ;;  %v499_v52 = vlaneseq  ;;  %v634_v17 = vld [vmem:[#allocation11 + $0x68] sm:$0xff] }
  0x70   :  { %374 = vmatpush1.msra.mxu0 %v136_v54  ;;  %490 = vmatprep.mubr.f32.mxu1 %v1801_v0  ;;  %v1890_v37 = vld [vmem:[#allocation10 + $0x70] sm:$0xff]  ;;  %v1908_v40 = vld [vmem:[#allocation10 + $0x58] sm:$0xff]  ;;  %v720_v18 = vld [vmem:[#allocation11 + $0xe0] sm:$0xff] }
  0x71   :  { %375 = vmatprep.subr.mxu0 %v133_v55  ;;  %441 = vmatpush1.msra.mxu1 %v146_v19  ;;  %v1914_v41 = vld [vmem:[#allocation10 + $0x50] sm:$0xff]  ;;  %v1932_v44 = vld [vmem:[#allocation10 + $0x38] sm:$0xff]  ;;  %v500_v53 = vshrl.u32 %v499_v52, 7  ;;  %v633_v19 = vld [vmem:[#allocation11 + $0x60] sm:$0xff] }
  0x72   :  { %376 = vmatpush1.msra.mxu0 %v132_v57  ;;  %442 = vmatprep.subr.mxu1 %v143_v20  ;;  %v1938_v45 = vld [vmem:[#allocation10 + $0x30] sm:$0xff]  ;;  %v1960_v48 = vld [vmem:[#allocation10 + $0x18] sm:$0xff] }
  0x73   :  { %377 = vmatprep.subr.mxu0 %v129_v59  ;;  %443 = vmatpush1.msra.mxu1 %v142_v21  ;;  %v1965_v49 = vld [vmem:[#allocation10 + $0x10] sm:$0xff]  ;;  %v509_v54 = vsub.s32 2, %v500_v53  ;;  %v513_v57 = vsub.s32 3, %v500_v53  ;;  %v501_v60 = vsub.s32 0, %v500_v53  ;;  %v723_v9 = vld [vmem:[#allocation11 + $0xf8] sm:$0xff] }
  0x74   :  { %378 = vmatpush1.msra.mxu0 %v128_v61  ;;  %444 = vmatprep.subr.mxu1 %v139_v22  ;;  %v497_v55 = vld [vmem:[%s2164_s4] sm:$0xf]  ;;  %v505_v61 = vsub.s32 1, %v500_v53  ;;  %v636_v11 = vld [vmem:[#allocation11 + $0x78] sm:$0xff]  ;;  %v713_v53 = vld [vmem:[#allocation11 + $0xa8] sm:$0xff] }
  0x75   :  { %379 = vmatprep.subr.mxu0 %v125_v63  ;;  %445 = vmatpush1.msra.mxu1 %v138_v23  ;;  %v1991_v56 = vrot.slane %v497_v55, %v509_v54  ;;  %v1993_v58 = vrot.slane %v497_v55, %v513_v57  ;;  %v502_v63 = vrot.slane %v497_v55, %v501_v60  ;;  %v635_v13 = vld [vmem:[#allocation11 + $0x70] sm:$0xff]  ;;  %v719_v20 = vld [vmem:[#allocation11 + $0xd8] sm:$0xff]  ;;  %v626_v54 = vld [vmem:[#allocation11 + $0x28] sm:$0xff] }
  0x76   :  { %380 = vmatpush1.msra.mxu0 %v124_v2  ;;  %446 = vmatprep.subr.mxu1 %v135_v24  ;;  %v506_v3 = vrot.slane %v497_v55, %v505_v61  ;;  %v632_v22 = vld [vmem:[#allocation11 + $0x58] sm:$0xff]  ;;  %v718_v23 = vld [vmem:[#allocation11 + $0xd0] sm:$0xff]  ;;  %v712_v55 = vld [vmem:[#allocation11 + $0xa0] sm:$0xff] }
  0x77   :  { %381 = vmatprep.subr.mxu0 %v121_v4  ;;  %447 = vmatpush1.msra.mxu1 %v134_v25  ;;  %v631_v24 = vld [vmem:[#allocation11 + $0x50] sm:$0xff]  ;;  %v717_v25 = vld [vmem:[#allocation11 + $0xc8] sm:$0xff]  ;;  %v625_v57 = vld [vmem:[#allocation11 + $0x20] sm:$0xff] }
  0x78   :  { %382 = vmatpush1.msra.mxu0 %v120_v6  ;;  %448 = vmatprep.subr.mxu1 %v131_v26  ;;  %v627_v52 = vld [vmem:[#allocation11 + $0x30] sm:$0xff] }
  0x79   :  { %383 = vmatprep.subr.mxu0 %v117_v8  ;;  %449 = vmatpush1.msra.mxu1 %v130_v27  ;;  %v630_v27 = vld [vmem:[#allocation11 + $0x48] sm:$0xff]  ;;  %v623_v60 = vld [vmem:[#allocation11 + $0x10] sm:$0xff] }
  0x7a   :  { %384 = vmatpush1.msra.mxu0 %v116_v10  ;;  %450 = vmatprep.subr.mxu1 %v127_v28  ;;  %v716_v28 = vld [vmem:[#allocation11 + $0xc0] sm:$0xff]  ;;  %v710_v61 = vld [vmem:[#allocation11 + $0x90] sm:$0xff] }
  0x7b   :  { %385 = vmatprep.subr.mxu0 %v113_v12  ;;  %451 = vmatpush1.msra.mxu1 %v126_v29  ;;  %v722_v12 = vld [vmem:[#allocation11 + $0xf0] sm:$0xff] }
  0x7c   :  { %386 = vmatpush1.msra.mxu0 %v112_v14  ;;  %452 = vmatprep.subr.mxu1 %v123_v30  ;;  %v721_v14 = vld [vmem:[#allocation11 + $0xe8] sm:$0xff]  ;;  %v629_v30 = vld [vmem:[#allocation11 + $0x40] sm:$0xff] }
  0x7d   :  { %420 = vmatmul.mubr.f32.vlgmr.msra.gmra.mxu0 %v1881_v16  ;;  %1348 = vmatprep.subr.mxu0 %v1801_v0 }
  0x7e   :  { %453 = vmatpush1.msra.mxu1 %v122_v31  ;;  %1349 = vmatpush3.msra.mxu0 %v1888_v36  ;;  %v715_v31 = vld [vmem:[#allocation11 + $0xb8] sm:$0xff] }
  0x7f   :  { %454 = vmatprep.subr.mxu1 %v119_v32  ;;  %1350 = vmatprep.subr.mxu0 %v1801_v0 }
  0x80   :  { %455 = vmatpush1.msra.mxu1 %v118_v33  ;;  %1351 = vmatpush3.msra.mxu0 %v1890_v37  ;;  %v628_v33 = vld [vmem:[#allocation11 + $0x38] sm:$0xff] }
  0x81   :  { %456 = vmatprep.subr.mxu1 %v115_v34  ;;  %1352 = vmatprep.subr.mxu0 %v1801_v0  ;;  %v714_v34 = vld [vmem:[#allocation11 + $0xb0] sm:$0xff] }
  0x82   :  { %457 = vmatpush1.msra.mxu1 %v114_v35  ;;  %1353 = vmatpush3.msra.mxu0 %v1896_v38 }
  0x83   :  { %491 = vmatmul.mubr.f32.vlgmr.msra.gmra.mxu1 %v1881_v16  ;;  %1383 = vmatprep.subr.mxu1 %v1801_v0 }
  0x84   :  { %1384 = vmatpush3.msra.mxu1 %v1888_v36  ;;  %1354 = vmatprep.subr.mxu0 %v1801_v0 }
  0x85   :  { %1385 = vmatprep.subr.mxu1 %v1801_v0  ;;  %1355 = vmatpush3.msra.mxu0 %v1902_v39 }
  0x86   :  { %1386 = vmatpush3.msra.mxu1 %v1890_v37  ;;  %1356 = vmatprep.subr.mxu0 %v1801_v0 }
  0x87   :  { %1387 = vmatprep.subr.mxu1 %v1801_v0  ;;  %1357 = vmatpush3.msra.mxu0 %v1908_v40 }
  0x88   :  { %1388 = vmatpush3.msra.mxu1 %v1896_v38  ;;  %1358 = vmatprep.subr.mxu0 %v1801_v0 }
  0x89   :  { %1389 = vmatprep.subr.mxu1 %v1801_v0  ;;  %1359 = vmatpush3.msra.mxu0 %v1914_v41 }
  0x8a   :  { %1390 = vmatpush3.msra.mxu1 %v1902_v39  ;;  %1360 = vmatprep.subr.mxu0 %v1801_v0 }
  0x8b   :  { %1391 = vmatprep.subr.mxu1 %v1801_v0  ;;  %1361 = vmatpush3.msra.mxu0 %v1920_v42 }
  0x8c   :  { %1392 = vmatpush3.msra.mxu1 %v1908_v40  ;;  %1362 = vmatprep.subr.mxu0 %v1801_v0 }
  0x8d   :  { %1393 = vmatprep.subr.mxu1 %v1801_v0  ;;  %1363 = vmatpush3.msra.mxu0 %v1926_v43 }
  0x8e   :  { %1394 = vmatpush3.msra.mxu1 %v1914_v41  ;;  %1364 = vmatprep.subr.mxu0 %v1801_v0 }
  0x8f   :  { %1395 = vmatprep.subr.mxu1 %v1801_v0  ;;  %1365 = vmatpush3.msra.mxu0 %v1932_v44 }
  0x90   :  { %1396 = vmatpush3.msra.mxu1 %v1920_v42  ;;  %1366 = vmatprep.subr.mxu0 %v1801_v0 }
  0x91   :  { %1397 = vmatprep.subr.mxu1 %v1801_v0  ;;  %1367 = vmatpush3.msra.mxu0 %v1938_v45 }
  0x92   :  { %1398 = vmatpush3.msra.mxu1 %v1926_v43  ;;  %1368 = vmatprep.subr.mxu0 %v1801_v0 }
  0x93   :  { %1399 = vmatprep.subr.mxu1 %v1801_v0  ;;  %1369 = vmatpush3.msra.mxu0 %v1944_v46 }
  0x94   :  { %1400 = vmatpush3.msra.mxu1 %v1932_v44  ;;  %1370 = vmatprep.subr.mxu0 %v1801_v0 }
  0x95   :  { %1401 = vmatprep.subr.mxu1 %v1801_v0  ;;  %1371 = vmatpush3.msra.mxu0 %v1950_v47 }
  0x96   :  { %1402 = vmatpush3.msra.mxu1 %v1938_v45  ;;  %1372 = vmatprep.subr.mxu0 %v1801_v0 }
  0x97   :  { %1403 = vmatprep.subr.mxu1 %v1801_v0  ;;  %1373 = vmatpush3.msra.mxu0 %v1960_v48 }
  0x98   :  { %1404 = vmatpush3.msra.mxu1 %v1944_v46  ;;  %1374 = vmatprep.subr.mxu0 %v1801_v0 }
  0x99   :  { %1405 = vmatprep.subr.mxu1 %v1801_v0  ;;  %1375 = vmatpush3.msra.mxu0 %v1965_v49 }
  0x9a   :  { %1406 = vmatpush3.msra.mxu1 %v1950_v47  ;;  %1376 = vmatprep.subr.mxu0 %v1801_v0 }
  0x9b   :  { %1407 = vmatprep.subr.mxu1 %v1801_v0  ;;  %1377 = vmatpush3.msra.mxu0 %v1971_v50 }
  0x9c   :  { %1408 = vmatpush3.msra.mxu1 %v1960_v48  ;;  %1378 = vmatprep.subr.mxu0 %v1801_v0 }
  0x9d   :  { %1409 = vmatprep.subr.mxu1 %v1801_v0  ;;  %1379 = vmatpush3.msra.mxu0 %v1977_v51 }
  0x9e   :  { %1410 = vmatpush3.msra.mxu1 %v1965_v49  ;;  %1380 = vmatprep.mubr.msk.f32.mxu0 %vm1802_vm1, %v1801_v0 }
  0x9f   :  { %1411 = vmatprep.subr.mxu1 %v1801_v0  ;;  %1415 = vmatprep.mubr.msk.f32.mxu1 %vm1802_vm1, %v1801_v0 }
  0xa0   :  { %1412 = vmatpush3.msra.mxu1 %v1971_v50  ;;  %1418 = vmatprep.subr.mxu0 %v1801_v0 }
  0xa1   :  { %1413 = vmatprep.subr.mxu1 %v1801_v0 }
  0xa2   :  { %1414 = vmatpush3.msra.mxu1 %v1977_v51 }
  0xa3   :  { %1453 = vmatprep.subr.mxu1 %v1801_v0 }
 0x11d   :  { %v279_v59 = vpop.f32.mrf.mxu0 }
 0x11f   :  { %v281_v62 = vpop.f32.mrf.mxu0 }
 0x121   :  { %v1998_v15 = vpop.f32.mrf.mxu1 }
 0x123   :  { %v352_v21 = vpop.f32.mrf.mxu1 }
 0x13d   :  { %v421_v1 = vpop.f32.mrf.mxu0 }
 0x13e   :  { %v422_v2 = vadd.f32 %v421_v1, %v279_v59  ;;  %v624_v59 = vld [vmem:[#allocation11 + $0x18] sm:$0xff]  ;;  %v621_v1 = vld [vmem:[#allocation11] sm:$0xff] }
 0x13f   :  { %v423_v4 = vpop.f32.mrf.mxu0 }
 0x140   :  { %v519_v5 = vadd.f32 %v502_v63, %v422_v2  ;;  %v424_v6 = vadd.f32 %v423_v4, %v281_v62  ;;  %v622_v62 = vld [vmem:[#allocation11 + $0x8] sm:$0xff]  ;;  %v708_v2 = vld [vmem:[#allocation11 + $0x80] sm:$0xff] }
 0x141   :  { %v709_v63 = vld [vmem:[#allocation11 + $0x88] sm:$0xff] }
 0x142   :  { %v523_v7 = vmax.f32 %v519_v5, 0.0  ;;  %v520_v8 = vadd.f32 %v506_v3, %v424_v6  ;;  %v2041_v3 = vld [vmem:[%s2166_s6] ss:$0 sm:$0xff] }
 0x143   :  { %v2008_v26 = vpop.f32.mrf.mxu1 }
 0x144   :  { %v524_v10 = vmax.f32 %v520_v8, 0.0  ;;  %1381 = vmatmul.mubr.f32.vlgmr.msra.gmra.mxu0 %v523_v7 }
 0x145   :  { %1419 = vmatpush3.msra.mxu0 %v723_v9  ;;  %1450 = vmatprep.mubr.msk.f32.mxu0 %vm1802_vm1, %v1801_v0  ;;  %v494_v29 = vpop.f32.mrf.mxu1 }
 0x146   :  { %1416 = vmatmul.mubr.f32.vlgmr.msra.gmra.mxu1 %v524_v10  ;;  %1420 = vmatprep.subr.mxu0 %v1801_v0  ;;  %v495_v32 = vadd.f32 %v494_v29, %v352_v21  ;;  %v1104_v29 = vld [vmem:[#allocation11 + $0x1d8] sm:$0xff] }
 0x147   :  { %1454 = vmatpush3.msra.mxu1 %v636_v11  ;;  %1421 = vmatpush3.msra.mxu0 %v722_v12  ;;  %v493_v12 = vadd.f32 %v2008_v26, %v1998_v15  ;;  %v1107_v26 = vld [vmem:[#allocation11 + $0x1f0] sm:$0xff] }
 0x148   :  { %1455 = vmatprep.subr.mxu1 %v1801_v0  ;;  %1422 = vmatprep.subr.mxu0 %v1801_v0  ;;  %v2017_v35 = vadd.f32 %v1993_v58, %v495_v32  ;;  %v711_v58 = vld [vmem:[#allocation11 + $0x98] sm:$0xff]  ;;  %v1101_v32 = vld [vmem:[#allocation11 + $0x1c0] sm:$0xff] }
 0x149   :  { %1456 = vmatpush3.msra.mxu1 %v635_v13  ;;  %1423 = vmatpush3.msra.mxu0 %v721_v14  ;;  %v521_v13 = vadd.f32 %v1991_v56, %v493_v12  ;;  %v935_v56 = vld [vmem:[#allocation11 + $0x100] sm:$0xff] }
 0x14a   :  { %1457 = vmatprep.subr.mxu1 %v1801_v0  ;;  %1424 = vmatprep.subr.mxu0 %v1801_v0 }
 0x14b   :  { %1458 = vmatpush3.msra.mxu1 %v634_v17  ;;  %1425 = vmatpush3.msra.mxu0 %v720_v18  ;;  %v525_v14 = vmax.f32 %v521_v13, 0.0 }
 0x14c   :  { %1459 = vmatprep.subr.mxu1 %v1801_v0  ;;  %1426 = vmatprep.subr.mxu0 %v1801_v0 }
 0x14d   :  { %1460 = vmatpush3.msra.mxu1 %v633_v19  ;;  %1427 = vmatpush3.msra.mxu0 %v719_v20 }
 0x14e   :  { %1461 = vmatprep.subr.mxu1 %v1801_v0  ;;  %1428 = vmatprep.subr.mxu0 %v1801_v0 }
 0x14f   :  { %1462 = vmatpush3.msra.mxu1 %v632_v22  ;;  %1429 = vmatpush3.msra.mxu0 %v718_v23 }
 0x150   :  { %1463 = vmatprep.subr.mxu1 %v1801_v0  ;;  %1430 = vmatprep.subr.mxu0 %v1801_v0 }
 0x151   :  { %1464 = vmatpush3.msra.mxu1 %v631_v24  ;;  %1431 = vmatpush3.msra.mxu0 %v717_v25  ;;  %v1108_v25 = vld [vmem:[#allocation11 + $0x1f8] sm:$0xff] }
 0x152   :  { %1465 = vmatprep.subr.mxu1 %v1801_v0  ;;  %1432 = vmatprep.subr.mxu0 %v1801_v0 }
 0x153   :  { %1466 = vmatpush3.msra.mxu1 %v630_v27  ;;  %1433 = vmatpush3.msra.mxu0 %v716_v28  ;;  %v1106_v27 = vld [vmem:[#allocation11 + $0x1e8] sm:$0xff]  ;;  %v1105_v28 = vld [vmem:[#allocation11 + $0x1e0] sm:$0xff] }
 0x154   :  { %1467 = vmatprep.subr.mxu1 %v1801_v0  ;;  %1434 = vmatprep.subr.mxu0 %v1801_v0 }
 0x155   :  { %1468 = vmatpush3.msra.mxu1 %v629_v30  ;;  %1435 = vmatpush3.msra.mxu0 %v715_v31  ;;  %v1103_v30 = vld [vmem:[#allocation11 + $0x1d0] sm:$0xff]  ;;  %v1102_v31 = vld [vmem:[#allocation11 + $0x1c8] sm:$0xff] }
 0x156   :  { %1469 = vmatprep.subr.mxu1 %v1801_v0  ;;  %1436 = vmatprep.subr.mxu0 %v1801_v0 }
 0x157   :  { %1470 = vmatpush3.msra.mxu1 %v628_v33  ;;  %1437 = vmatpush3.msra.mxu0 %v714_v34  ;;  %v1100_v33 = vld [vmem:[#allocation11 + $0x1b8] sm:$0xff]  ;;  %v1099_v34 = vld [vmem:[#allocation11 + $0x1b0] sm:$0xff] }
 0x158   :  { %1471 = vmatprep.subr.mxu1 %v1801_v0  ;;  %1438 = vmatprep.subr.mxu0 %v1801_v0 }
 0x159   :  { %1472 = vmatpush3.msra.mxu1 %v627_v52  ;;  %1439 = vmatpush3.msra.mxu0 %v713_v53  ;;  %v1097_v52 = vld [vmem:[#allocation11 + $0x1a0] sm:$0xff]  ;;  %v1096_v53 = vld [vmem:[#allocation11 + $0x198] sm:$0xff] }
 0x15a   :  { %1473 = vmatprep.subr.mxu1 %v1801_v0  ;;  %1440 = vmatprep.subr.mxu0 %v1801_v0 }
 0x15b   :  { %1474 = vmatpush3.msra.mxu1 %v626_v54  ;;  %1441 = vmatpush3.msra.mxu0 %v712_v55  ;;  %v1095_v54 = vld [vmem:[#allocation11 + $0x190] sm:$0xff]  ;;  %v1094_v55 = vld [vmem:[#allocation11 + $0x188] sm:$0xff] }
 0x15c   :  { %1475 = vmatprep.subr.mxu1 %v1801_v0  ;;  %1442 = vmatprep.subr.mxu0 %v1801_v0 }
 0x15d   :  { %1476 = vmatpush3.msra.mxu1 %v625_v57  ;;  %1443 = vmatpush3.msra.mxu0 %v711_v58 }
 0x15e   :  { %1477 = vmatprep.subr.mxu1 %v1801_v0  ;;  %1444 = vmatprep.subr.mxu0 %v1801_v0 }
 0x15f   :  { %1478 = vmatpush3.msra.mxu1 %v624_v59  ;;  %1485 = vmatprep.mubr.msk.f32.mxu1 %vm1802_vm1, %v1801_v0  ;;  %v1093_v59 = vld [vmem:[#allocation11 + $0x180] sm:$0xff] }
 0x160   :  { %1479 = vmatprep.subr.mxu1 %v1801_v0  ;;  %1445 = vmatpush3.msra.mxu0 %v710_v61 }
 0x161   :  { %1480 = vmatpush3.msra.mxu1 %v623_v60  ;;  %1446 = vmatprep.subr.mxu0 %v1801_v0 }
 0x162   :  { %1481 = vmatprep.subr.mxu1 %v1801_v0  ;;  %1447 = vmatpush3.msra.mxu0 %v709_v63 }
 0x163   :  { %1482 = vmatpush3.msra.mxu1 %v622_v62  ;;  %1448 = vmatprep.subr.mxu0 %v1801_v0 }
 0x164   :  { %1483 = vmatprep.subr.mxu1 %v1801_v0  ;;  %1449 = vmatpush3.msra.mxu0 %v708_v2 }
 0x165   :  { %1484 = vmatpush3.msra.mxu1 %v621_v1  ;;  %1488 = vmatprep.subr.mxu0 %v1801_v0 }
 0x166   :  { %1523 = vmatprep.subr.mxu1 %v1801_v0 }
 0x204   :  { %v616_v4 = vpop.f32.mrf.mxu0 }
 0x205   :  { %v617_v5 = vadd.f32 %v2041_v3, %v616_v4  ;;  %v1211_v4 = vld [vmem:[%s2168_s8] ss:$0 sm:$0xff] }
 0x206   :  { %v1382_v6 = vpop.f32.mrf.mxu0  ;;  %v703_v7 = vpop.f32.mrf.mxu1 }
 0x207   :  { %v620_v8 = vmax.f32 %v617_v5, 0.0  ;;  %v704_v9 = vadd.f32 %v2041_v3, %v703_v7 }
 0x208   :  { %v1417_v10 = vpop.f32.mrf.mxu1 }
 0x209   :  { %v707_v11 = vmax.f32 %v704_v9, 0.0  ;;  %1486 = vmatmul.mubr.f32.vlgmr.msra.gmra.mxu1 %v620_v8 }
 0x20a   :  { %1555 = vmatprep.mubr.msk.f32.mxu1 %vm1802_vm1, %v1801_v0 }
 0x20b   :  { %1451 = vmatmul.mubr.f32.vlgmr.msra.gmra.mxu0 %v707_v11 }
 0x20c   :  { %1489 = vmatpush3.msra.mxu0 %v1888_v36  ;;  %1520 = vmatprep.mubr.msk.f32.mxu0 %vm1802_vm1, %v1801_v0 }
 0x20d   :  { %1490 = vmatprep.subr.mxu0 %v1801_v0 }
 0x20e   :  { %1491 = vmatpush3.msra.mxu0 %v1890_v37 }
 0x20f   :  { %1492 = vmatprep.subr.mxu0 %v1801_v0 }
 0x210   :  { %1493 = vmatpush3.msra.mxu0 %v1896_v38 }
 0x211   :  { %1494 = vmatprep.subr.mxu0 %v1801_v0 }
 0x212   :  { %1495 = vmatpush3.msra.mxu0 %v1902_v39 }
 0x213   :  { %1496 = vmatprep.subr.mxu0 %v1801_v0 }
 0x214   :  { %1497 = vmatpush3.msra.mxu0 %v1908_v40 }
 0x215   :  { %1498 = vmatprep.subr.mxu0 %v1801_v0 }
 0x216   :  { %1499 = vmatpush3.msra.mxu0 %v1914_v41 }
 0x217   :  { %1500 = vmatprep.subr.mxu0 %v1801_v0 }
 0x218   :  { %1501 = vmatpush3.msra.mxu0 %v1920_v42 }
 0x219   :  { %1502 = vmatprep.subr.mxu0 %v1801_v0 }
 0x21a   :  { %1503 = vmatpush3.msra.mxu0 %v1926_v43 }
 0x21b   :  { %1504 = vmatprep.subr.mxu0 %v1801_v0 }
 0x21c   :  { %1505 = vmatpush3.msra.mxu0 %v1932_v44 }
 0x21d   :  { %1506 = vmatprep.subr.mxu0 %v1801_v0 }
 0x21e   :  { %1507 = vmatpush3.msra.mxu0 %v1938_v45 }
 0x21f   :  { %1508 = vmatprep.subr.mxu0 %v1801_v0 }
 0x220   :  { %1509 = vmatpush3.msra.mxu0 %v1944_v46 }
 0x221   :  { %1510 = vmatprep.subr.mxu0 %v1801_v0 }
 0x222   :  { %1511 = vmatpush3.msra.mxu0 %v1950_v47 }
 0x223   :  { %1512 = vmatprep.subr.mxu0 %v1801_v0 }
 0x224   :  { %1513 = vmatpush3.msra.mxu0 %v1960_v48 }
 0x225   :  { %1514 = vmatprep.subr.mxu0 %v1801_v0 }
 0x226   :  { %1515 = vmatpush3.msra.mxu0 %v1965_v49 }
 0x227   :  { %1516 = vmatprep.subr.mxu0 %v1801_v0 }
 0x228   :  { %1517 = vmatpush3.msra.mxu0 %v1971_v50 }
 0x229   :  { %1518 = vmatprep.subr.mxu0 %v1801_v0 }
 0x22a   :  { %1519 = vmatpush3.msra.mxu0 %v1977_v51 }
 0x22b   :  { %1521 = vmatmul.mubr.f32.vlgmr.msra.gmra.mxu0 %v525_v14  ;;  %1558 = vmatprep.subr.mxu0 %v1801_v0 }
 0x22c   :  { %1559 = vmatpush3.msra.mxu0 %v1888_v36  ;;  %1590 = vmatprep.mubr.msk.f32.mxu0 %vm1802_vm1, %v1801_v0  ;;  %v526_v36 = vmax.f32 %v2017_v35, 0.0  ;;  %v1098_v35 = vld [vmem:[#allocation11 + $0x1a8] sm:$0xff] }
 0x22d   :  { %1560 = vmatprep.subr.mxu0 %v1801_v0 }
 0x22e   :  { %1561 = vmatpush3.msra.mxu0 %v1890_v37  ;;  %v950_v37 = vld [vmem:[#allocation11 + $0x178] sm:$0xff] }
 0x22f   :  { %1562 = vmatprep.subr.mxu0 %v1801_v0  ;;  %1524 = vmatpush3.msra.mxu1 %v950_v37 }
 0x230   :  { %1563 = vmatpush3.msra.mxu0 %v1896_v38  ;;  %v949_v38 = vld [vmem:[#allocation11 + $0x170] sm:$0xff]  ;;  %1525 = vmatprep.subr.mxu1 %v1801_v0 }
 0x231   :  { %1564 = vmatprep.subr.mxu0 %v1801_v0  ;;  %1526 = vmatpush3.msra.mxu1 %v949_v38 }
 0x232   :  { %1565 = vmatpush3.msra.mxu0 %v1902_v39  ;;  %v948_v39 = vld [vmem:[#allocation11 + $0x168] sm:$0xff]  ;;  %1527 = vmatprep.subr.mxu1 %v1801_v0 }
 0x233   :  { %1566 = vmatprep.subr.mxu0 %v1801_v0  ;;  %1528 = vmatpush3.msra.mxu1 %v948_v39 }
 0x234   :  { %1567 = vmatpush3.msra.mxu0 %v1908_v40  ;;  %v947_v40 = vld [vmem:[#allocation11 + $0x160] sm:$0xff]  ;;  %1529 = vmatprep.subr.mxu1 %v1801_v0 }
 0x235   :  { %1568 = vmatprep.subr.mxu0 %v1801_v0  ;;  %1530 = vmatpush3.msra.mxu1 %v947_v40 }
 0x236   :  { %1569 = vmatpush3.msra.mxu0 %v1914_v41  ;;  %v946_v41 = vld [vmem:[#allocation11 + $0x158] sm:$0xff]  ;;  %1531 = vmatprep.subr.mxu1 %v1801_v0 }
 0x237   :  { %1570 = vmatprep.subr.mxu0 %v1801_v0  ;;  %1532 = vmatpush3.msra.mxu1 %v946_v41 }
 0x238   :  { %1571 = vmatpush3.msra.mxu0 %v1920_v42  ;;  %v945_v42 = vld [vmem:[#allocation11 + $0x150] sm:$0xff]  ;;  %1533 = vmatprep.subr.mxu1 %v1801_v0 }
 0x239   :  { %1572 = vmatprep.subr.mxu0 %v1801_v0  ;;  %1534 = vmatpush3.msra.mxu1 %v945_v42 }
 0x23a   :  { %1573 = vmatpush3.msra.mxu0 %v1926_v43  ;;  %v944_v43 = vld [vmem:[#allocation11 + $0x148] sm:$0xff]  ;;  %1535 = vmatprep.subr.mxu1 %v1801_v0 }
 0x23b   :  { %1574 = vmatprep.subr.mxu0 %v1801_v0  ;;  %1536 = vmatpush3.msra.mxu1 %v944_v43 }
 0x23c   :  { %1575 = vmatpush3.msra.mxu0 %v1932_v44  ;;  %v943_v44 = vld [vmem:[#allocation11 + $0x140] sm:$0xff]  ;;  %1537 = vmatprep.subr.mxu1 %v1801_v0 }
 0x23d   :  { %1576 = vmatprep.subr.mxu0 %v1801_v0  ;;  %1538 = vmatpush3.msra.mxu1 %v943_v44 }
 0x23e   :  { %1577 = vmatpush3.msra.mxu0 %v1938_v45  ;;  %v942_v45 = vld [vmem:[#allocation11 + $0x138] sm:$0xff]  ;;  %1539 = vmatprep.subr.mxu1 %v1801_v0 }
 0x23f   :  { %1578 = vmatprep.subr.mxu0 %v1801_v0  ;;  %1540 = vmatpush3.msra.mxu1 %v942_v45 }
 0x240   :  { %1579 = vmatpush3.msra.mxu0 %v1944_v46  ;;  %v941_v46 = vld [vmem:[#allocation11 + $0x130] sm:$0xff]  ;;  %1541 = vmatprep.subr.mxu1 %v1801_v0 }
 0x241   :  { %1580 = vmatprep.subr.mxu0 %v1801_v0  ;;  %1542 = vmatpush3.msra.mxu1 %v941_v46 }
 0x242   :  { %1581 = vmatpush3.msra.mxu0 %v1950_v47  ;;  %v940_v47 = vld [vmem:[#allocation11 + $0x128] sm:$0xff]  ;;  %1543 = vmatprep.subr.mxu1 %v1801_v0 }
 0x243   :  { %1582 = vmatprep.subr.mxu0 %v1801_v0  ;;  %1544 = vmatpush3.msra.mxu1 %v940_v47 }
 0x244   :  { %1583 = vmatpush3.msra.mxu0 %v1960_v48  ;;  %v939_v48 = vld [vmem:[#allocation11 + $0x120] sm:$0xff]  ;;  %1545 = vmatprep.subr.mxu1 %v1801_v0 }
 0x245   :  { %1584 = vmatprep.subr.mxu0 %v1801_v0  ;;  %1546 = vmatpush3.msra.mxu1 %v939_v48 }
 0x246   :  { %1585 = vmatpush3.msra.mxu0 %v1965_v49  ;;  %v938_v49 = vld [vmem:[#allocation11 + $0x118] sm:$0xff]  ;;  %1547 = vmatprep.subr.mxu1 %v1801_v0 }
 0x247   :  { %1586 = vmatprep.subr.mxu0 %v1801_v0  ;;  %1548 = vmatpush3.msra.mxu1 %v938_v49 }
 0x248   :  { %1587 = vmatpush3.msra.mxu0 %v1971_v50  ;;  %1549 = vmatprep.subr.mxu1 %v1801_v0  ;;  %v937_v50 = vld [vmem:[#allocation11 + $0x110] sm:$0xff] }
 0x249   :  { %1588 = vmatprep.subr.mxu0 %v1801_v0  ;;  %1550 = vmatpush3.msra.mxu1 %v937_v50 }
 0x24a   :  { %1589 = vmatpush3.msra.mxu0 %v1977_v51  ;;  %1551 = vmatprep.subr.mxu1 %v1801_v0  ;;  %v936_v51 = vld [vmem:[#allocation11 + $0x108] sm:$0xff] }
 0x24b   :  { %1591 = vmatmul.mubr.f32.vlgmr.msra.gmra.mxu0 %v526_v36  ;;  %1552 = vmatpush3.msra.mxu1 %v936_v51 }
 0x24c   :  { %1553 = vmatprep.subr.mxu1 %v1801_v0 }
 0x24d   :  { %1554 = vmatpush3.msra.mxu1 %v935_v56 }
 0x24e   :  { %1593 = vmatprep.subr.mxu1 %v1801_v0 }
 0x2c9   :  { %v860_v15 = vpop.f32.mrf.mxu1 }
 0x2cb   :  { %v790_v17 = vpop.f32.mrf.mxu0  ;;  %v1487_v18 = vpop.f32.mrf.mxu1 }
 0x2cc   :  { %v861_v19 = vadd.f32 %v860_v15, %v790_v17 }
 0x2cd   :  { %v1452_v20 = vpop.f32.mrf.mxu0 }
 0x2eb   :  { %v930_v21 = vpop.f32.mrf.mxu0 }
 0x2ec   :  { %v931_v22 = vadd.f32 %v2041_v3, %v930_v21 }
 0x2ed   :  { %v1522_v23 = vpop.f32.mrf.mxu0 }
 0x2ee   :  { %v934_v24 = vmax.f32 %v931_v22, 0.0 }
 0x2f0   :  { %1556 = vmatmul.mubr.f32.vlgmr.msra.gmra.mxu1 %v934_v24 }
 0x2f1   :  { %1594 = vmatpush3.msra.mxu1 %v1108_v25  ;;  %1625 = vmatprep.mubr.msk.f32.mxu1 %vm1802_vm1, %v1801_v0 }
 0x2f2   :  { %1595 = vmatprep.subr.mxu1 %v1801_v0 }
 0x2f3   :  { %1596 = vmatpush3.msra.mxu1 %v1107_v26 }
 0x2f4   :  { %1597 = vmatprep.subr.mxu1 %v1801_v0 }
 0x2f5   :  { %1598 = vmatpush3.msra.mxu1 %v1106_v27 }
 0x2f6   :  { %1599 = vmatprep.subr.mxu1 %v1801_v0 }
 0x2f7   :  { %1600 = vmatpush3.msra.mxu1 %v1105_v28 }
 0x2f8   :  { %1601 = vmatprep.subr.mxu1 %v1801_v0 }
 0x2f9   :  { %1602 = vmatpush3.msra.mxu1 %v1104_v29 }
 0x2fa   :  { %1603 = vmatprep.subr.mxu1 %v1801_v0 }
 0x2fb   :  { %1604 = vmatpush3.msra.mxu1 %v1103_v30 }
 0x2fc   :  { %1605 = vmatprep.subr.mxu1 %v1801_v0 }
 0x2fd   :  { %1606 = vmatpush3.msra.mxu1 %v1102_v31 }
 0x2fe   :  { %1607 = vmatprep.subr.mxu1 %v1801_v0 }
 0x2ff   :  { %1608 = vmatpush3.msra.mxu1 %v1101_v32 }
 0x300   :  { %1609 = vmatprep.subr.mxu1 %v1801_v0 }
 0x301   :  { %1610 = vmatpush3.msra.mxu1 %v1100_v33 }
 0x302   :  { %1611 = vmatprep.subr.mxu1 %v1801_v0 }
 0x303   :  { %1612 = vmatpush3.msra.mxu1 %v1099_v34 }
 0x304   :  { %1613 = vmatprep.subr.mxu1 %v1801_v0 }
 0x305   :  { %1614 = vmatpush3.msra.mxu1 %v1098_v35 }
 0x306   :  { %1615 = vmatprep.subr.mxu1 %v1801_v0 }
 0x307   :  { %1616 = vmatpush3.msra.mxu1 %v1097_v52 }
 0x308   :  { %1617 = vmatprep.subr.mxu1 %v1801_v0 }
 0x309   :  { %1618 = vmatpush3.msra.mxu1 %v1096_v53 }
 0x30a   :  { %1619 = vmatprep.subr.mxu1 %v1801_v0 }
 0x30b   :  { %v1088_v57 = vpop.f32.mrf.mxu0  ;;  %1620 = vmatpush3.msra.mxu1 %v1095_v54 }
 0x30c   :  { %v1089_v58 = vadd.f32 %v2041_v3, %v1088_v57  ;;  %1621 = vmatprep.subr.mxu1 %v1801_v0 }
 0x30d   :  { %v1592_v60 = vpop.f32.mrf.mxu0  ;;  %1622 = vmatpush3.msra.mxu1 %v1094_v55 }
 0x30e   :  { %v1092_v61 = vmax.f32 %v1089_v58, 0.0  ;;  %1623 = vmatprep.subr.mxu1 %v1801_v0 }
 0x30f   :  { %1624 = vmatpush3.msra.mxu1 %v1093_v59 }
 0x310   :  { %1626 = vmatmul.mubr.f32.vlgmr.msra.gmra.mxu1 %v1092_v61 }
 0x3b0   :  { %v1017_v62 = vpop.f32.mrf.mxu1 }
 0x3b1   :  { %v1021_v1 = vadd.f32 %v1017_v62, %v861_v19 }
 0x3b2   :  { %v1557_v63 = vpop.f32.mrf.mxu1 }
 0x3d0   :  { %v1175_v2 = vpop.f32.mrf.mxu1 }
 0x3d1   :  { %v1179_v5 = vadd.f32 %v1175_v2, %v1021_v1 }
 0x3d2   :  { %v1627_v3 = vpop.f32.mrf.mxu1 }
 0x3d3   :  { %v1187_v6 = vadd.f32 %v1211_v4, %v1179_v5 }
 0x3d5   :  { %v1188_v7 = vadd.f32 %v1187_v6, %v1881_v16 }
 0x3d7   :  { %1189 = vst [vmem:[#allocation13] sm:$0xff] %v1188_v7 }
 0x3d8   :  { %1772 = shalt.err (!%p1769_p6)
}
 0x3d9   :  { %1199 = dma.vmem_to_hbm [thread:$0]  %s1197_s21, 128, %s2169_s9, [#allocation4]  }
 0x3da   :  { %1789 = dma.done.wait [#allocation4], 128  }
 0x3db   :  { %1790 = vsyncadd [#allocation4], 4294967168 }
 0x3dc   :  { %1203 = vsyncpa [#allocation3], 1 }
 0x3dd   :  { %1204 = vsyncpa [#allocation6], 1 }
 0x3de   :  { %1205 = vsyncpa [#allocation9], 1 }
 0x3df   :  { %1206 = vsyncpa [#allocation12], 1 }
 0x3e0   :  { %1207 = vsyncpa [#allocation4], 1 }

</bundles_post_ra>
